<compile_context>
chip_gen: v7x
topology: tpu7x:2x2x1
jax: 0.10.0
libtpu: 0.0.40
codegen_flags: <defaults>
</compile_context>

<pallas_src>
import functools

import jax
import jax.numpy as jnp
from jax.experimental import pallas as pl
from jax.experimental.pallas import tpu as pltpu


def _round_up(x, m):
    return ((x + m - 1) // m) * m


def resblock_kernel(x_ref, w1_ref, g1_ref, b1_ref,
                    w2_ref, g2_ref, b2_ref,
                    ws_ref, gs_ref, bs_ref,
                    out_ref, *, NL, Mp, L, K, dil, pad, eps, mm_dtype, skip_proj):
    # Hoisted lane bookkeeping (shared by both convs and all three BatchNorms).
    lane = jax.lax.broadcasted_iota(jnp.int32, (1, Mp), 1)
    seg = lane % L                                    # position within each length-L segment
    validf = (lane < NL).astype(jnp.float32)          # 1.0 on real columns, 0.0 on lane padding

    tap_masks = []
    for k in range(K):
        o = k * dil - pad
        if o == 0:
            tap_masks.append(None)
        elif o > 0:
            tap_masks.append(seg < (L - o))
        else:
            tap_masks.append(seg >= (-o))

    def im2col(x):
        # x: (C, Mp) -> (K*C, Mp); tap k reads x[:, m + k*dil - pad] within its own
        # length-L segment, zero outside (== the conv's implicit zero padding).
        taps = []
        for k in range(K):
            o = k * dil - pad
            t = x if o == 0 else pltpu.roll(x, shift=(-o) % Mp, axis=1)
            if tap_masks[k] is not None:
                t = jnp.where(tap_masks[k], t, 0.0)
            taps.append(t)
        return jnp.concatenate(taps, axis=0)

    def conv(x, w_ref_):
        # One lane-dense 2D GEMM per conv: (Cout, K*C) x (K*C, Mp) -> (Cout, Mp), f32 acc.
        return jnp.dot(w_ref_[...], im2col(x), preferred_element_type=jnp.float32)

    inv_m = 1.0 / float(NL)

    def bn(y, g_ref_, b_ref_, relu):
        # Training-mode BatchNorm over (batch, length) == the valid lanes; two-pass
        # (mean, then centered sum-of-squares) stats, fused into one scale/shift FMA.
        mean = jnp.sum(y * validf, axis=1, keepdims=True) * inv_m        # (C, 1)
        cen = (y - mean) * validf
        var = jnp.sum(cen * cen, axis=1, keepdims=True) * inv_m
        scale = g_ref_[...] * jax.lax.rsqrt(var + eps)
        shift = b_ref_[...] - mean * scale
        z = y * scale + shift
        return jnp.maximum(z, 0.0) if relu else z

    x = x_ref[...]                                                       # (Cp, Mp) mm_dtype

    h = bn(conv(x, w1_ref), g1_ref, b1_ref, relu=True)                   # relu(bn1(conv1))
    y2 = bn(conv(h.astype(mm_dtype), w2_ref), g2_ref, b2_ref, relu=False)

    if skip_proj:   # 1x1 conv + BN (in_channels != out_channels)
        sk = jnp.dot(ws_ref[...], x, preferred_element_type=jnp.float32)
        sk = bn(sk, gs_ref, bs_ref, relu=False)
    else:           # identity skip (in_channels == out_channels)
        sk = x.astype(jnp.float32)

    out_ref[...] = jnp.maximum(y2 + sk, 0.0).astype(out_ref.dtype)


def residual_block_1d(x_ncl, params, *, kernel_size, dilation, padding,
                      eps=1e-5, matmul_dtype=jnp.bfloat16):
    """x_ncl: (N, C_in, L); params in native PyTorch layouts. Returns (N, C_out, L) f32."""
    N, Cin, L = x_ncl.shape
    K = kernel_size
    Cout = params["w1"].shape[0]
    skip_proj = "wskip" in params
    if not skip_proj:
        assert Cin == Cout, "identity skip requires in_channels == out_channels"
    # residual add requires "same" length (as the PyTorch module implicitly does)
    assert 2 * padding == dilation * (K - 1), "padding must preserve sequence length"

    NL = N * L
    Mp = _round_up(NL, 128)        # lane-dense columns (batch folded into the lane axis)
    Cp = _round_up(Cin, 8)         # sublane-aligned channel dims
    Coutp = _round_up(Cout, 8)

    # x: (N, Cin, L) -> (Cin, N*L) -> zero-pad to (Cp, Mp).  One-off HBM-side plumbing.
    x2d = jnp.transpose(x_ncl, (1, 0, 2)).reshape(Cin, NL)
    x2d = jnp.pad(x2d, ((0, Cp - Cin), (0, Mp - NL))).astype(matmul_dtype)

    def fold_w(w, cin_p):
        # (Cout, Cin, K) -> (Coutp, K*cin_p), tap-major / channel-minor, zero-padded.
        co, ci, kk = w.shape
        wt = jnp.transpose(w, (0, 2, 1))                                  # (Cout, K, Cin)
        wt = jnp.pad(wt, ((0, Coutp - co), (0, 0), (0, cin_p - ci)))
        return wt.reshape(Coutp, kk * cin_p).astype(matmul_dtype)

    def col(v):
        # (Cout,) -> (Coutp, 1) f32: per-channel BN params live on sublanes.
        return jnp.pad(v, (0, Coutp - Cout)).reshape(Coutp, 1).astype(jnp.float32)

    w1_2d = fold_w(params["w1"], Cp)
    w2_2d = fold_w(params["w2"], Coutp)
    if skip_proj:
        ws_2d = jnp.pad(params["wskip"][:, :, 0],
                        ((0, Coutp - Cout), (0, Cp - Cin))).astype(matmul_dtype)
        gs, bs = col(params["gs"]), col(params["bs"])
    else:  # unused placeholders (kernel never reads them on the identity path)
        ws_2d = jnp.zeros((Coutp, Cp), matmul_dtype)
        gs = bs = jnp.zeros((Coutp, 1), jnp.float32)

    kern = functools.partial(resblock_kernel, NL=NL, Mp=Mp, L=L, K=K,
                             dil=dilation, pad=padding, eps=eps,
                             mm_dtype=matmul_dtype, skip_proj=skip_proj)

    # Rough f32 VMEM footprint of the single-invocation form, with headroom,
    # clamped to stay within every generation's scoped limit (v5e default is 16 MiB).
    rows = Cp + 2 * K * max(Cp, Coutp) + 8 * Coutp
    vmem_bytes = int(min(max(6 * rows * Mp * 4, 4 << 20), 32 << 20))

    vmem = pl.BlockSpec(memory_space=pltpu.MemorySpace.VMEM)
    out2d = pl.pallas_call(
        kern,
        out_shape=jax.ShapeDtypeStruct((Coutp, Mp), jnp.float32),
        in_specs=[vmem] * 10,
        out_specs=vmem,
        compiler_params=pltpu.CompilerParams(vmem_limit_bytes=vmem_bytes),
    )(x2d,
      w1_2d, col(params["g1"]), col(params["b1"]),
      w2_2d, col(params["g2"]), col(params["b2"]),
      ws_2d, gs, bs)

    # (Coutp, Mp) -> (N, Cout, L): drop channel/lane padding, unfold batch.
    return jnp.transpose(out2d[:Cout, :NL].reshape(Cout, N, L), (1, 0, 2))


def _ref(x_ncl, p, *, K, dil, pad, eps=1e-5):
    """Pure-JAX reference (PyTorch semantics, NCL layout, training-mode BN)."""
    def conv(x, w, d, pd):
        return jax.lax.conv_general_dilated(
            x, w, window_strides=(1,), padding=[(pd, pd)], rhs_dilation=(d,),
            dimension_numbers=("NCH", "OIH", "NCH"))

    def bn(y, g, b):
        m = y.mean(axis=(0, 2), keepdims=True)
        v = ((y - m) ** 2).mean(axis=(0, 2), keepdims=True)
        return (y - m) * jax.lax.rsqrt(v + eps) * g[None, :, None] + b[None, :, None]

    out = jax.nn.relu(bn(conv(x_ncl, p["w1"], dil, pad), p["g1"], p["b1"]))
    out = bn(conv(out, p["w2"], dil, pad), p["g2"], p["b2"])
    skip = bn(conv(x_ncl, p["wskip"], 1, 0), p["gs"], p["bs"]) if "wskip" in p else x_ncl
    return jax.nn.relu(out + skip)


if __name__ == "__main__":
    # module config: in_channels=4, out_channels=8, kernel_size=3, dilation=1, padding=1
    N, Cin, Cout, L, K, dil, pad = 2, 4, 8, 16, 3, 1, 1

    key = jax.random.PRNGKey(0)
    kx, *kp = jax.random.split(key, 8)
    x = jax.random.normal(kx, (N, Cin, L), jnp.float32)

    # deterministic synthetic parameters in native PyTorch layouts
    params = {
        "w1": 0.2 * jax.random.normal(kp[0], (Cout, Cin, K), jnp.float32),   # Conv1d (O,I,K)
        "g1": 1.0 + 0.1 * jax.random.normal(kp[1], (Cout,), jnp.float32),
        "b1": 0.1 * jax.random.normal(kp[2], (Cout,), jnp.float32),
        "w2": 0.2 * jax.random.normal(kp[3], (Cout, Cout, K), jnp.float32),
        "g2": 1.0 + 0.1 * jax.random.normal(kp[4], (Cout,), jnp.float32),
        "b2": 0.1 * jax.random.normal(kp[5], (Cout,), jnp.float32),
        "wskip": 0.2 * jax.random.normal(kp[6], (Cout, Cin, 1), jnp.float32),
        "gs": jnp.ones((Cout,), jnp.float32),    # BN default init (weight=1)
        "bs": jnp.zeros((Cout,), jnp.float32),   # BN default init (bias=0)
    }

    ref = _ref(x, params, K=K, dil=dil, pad=pad)

    # projection-skip path: tight tolerance in f32, loosened for the bf16 MXU default
    for mm_dt, tol in ((jnp.float32, 2e-4), (jnp.bfloat16, 6e-2)):
        out = residual_block_1d(x, params, kernel_size=K, dilation=dil, padding=pad,
                                matmul_dtype=mm_dt)
        out = jax.block_until_ready(out)
        assert out.shape == (N, Cout, L)
        err = float(jnp.max(jnp.abs(out - ref)))
        assert jnp.allclose(out, ref, atol=tol, rtol=tol), (str(mm_dt), err)

    # identity-skip path: in_channels == out_channels -> nn.Sequential() skip
    ka, kb, kc = jax.random.split(jax.random.PRNGKey(1), 3)
    params_id = {k: params[k] for k in ("g1", "b1", "g2", "b2")}
    params_id["w1"] = 0.2 * jax.random.normal(ka, (Cout, Cout, K), jnp.float32)
    params_id["w2"] = 0.2 * jax.random.normal(kb, (Cout, Cout, K), jnp.float32)
    x_id = jax.random.normal(kc, (N, Cout, L), jnp.float32)
    out_id = residual_block_1d(x_id, params_id, kernel_size=K, dilation=dil, padding=pad,
                               matmul_dtype=jnp.float32)
    out_id = jax.block_until_ready(out_id)
    ref_id = _ref(x_id, params_id, K=K, dil=dil, pad=pad)
    err_id = float(jnp.max(jnp.abs(out_id - ref_id)))
    assert jnp.allclose(out_id, ref_id, atol=2e-4, rtol=2e-4), err_id

    print("KERNEL_OK")
</pallas_src>

<mosaic_0001>
module attributes {stable_mosaic.version = 11 : i64} {
  func.func @resblock_kernel(%arg0: memref<8x128xf32, #tpu.memory_space<vmem>>, %arg1: memref<8x24xf32, #tpu.memory_space<vmem>>, %arg2: memref<8x1xf32, #tpu.memory_space<vmem>>, %arg3: memref<8x1xf32, #tpu.memory_space<vmem>>, %arg4: memref<8x24xf32, #tpu.memory_space<vmem>>, %arg5: memref<8x1xf32, #tpu.memory_space<vmem>>, %arg6: memref<8x1xf32, #tpu.memory_space<vmem>>, %arg7: memref<8x8xf32, #tpu.memory_space<vmem>>, %arg8: memref<8x1xf32, #tpu.memory_space<vmem>>, %arg9: memref<8x1xf32, #tpu.memory_space<vmem>>, %arg10: memref<8x128xf32, #tpu.memory_space<vmem>>) attributes {dimension_semantics = [], scalar_prefetch = 0 : i64, scratch_operands = 0 : i64, tpu.core_type = #tpu.core_type<tc>} {
    %0 = tpu.iota {dimensions = array<i32: 1>} : vector<1x128xi32>
    %c16_i32 = arith.constant 16 : i32
    %c0_i32 = arith.constant 0 : i32
    %1 = arith.cmpi eq, %c16_i32, %c0_i32 : i32
    %c1_i32 = arith.constant 1 : i32
    %2 = arith.select %1, %c1_i32, %c16_i32 : i32
    %3 = vector.broadcast %2 : i32 to vector<1x128xi32>
    %4 = arith.remsi %0, %3 : vector<1x128xi32>
    %c0_i32_0 = arith.constant 0 : i32
    %5 = vector.broadcast %c0_i32_0 : i32 to vector<1x128xi32>
    %6 = arith.cmpi ne, %4, %5 : vector<1x128xi32>
    %c0_i32_1 = arith.constant 0 : i32
    %7 = vector.broadcast %c0_i32_1 : i32 to vector<1x128xi32>
    %8 = arith.cmpi slt, %4, %7 : vector<1x128xi32>
    %c0_i32_2 = arith.constant 0 : i32
    %9 = arith.cmpi slt, %2, %c0_i32_2 : i32
    %10 = vector.broadcast %9 : i1 to vector<1x128xi1>
    %11 = vector.broadcast %10 : vector<1x128xi1> to vector<1x128xi1>
    %12 = arith.xori %8, %11 : vector<1x128xi1>
    %13 = arith.andi %12, %6 : vector<1x128xi1>
    %14 = vector.broadcast %2 : i32 to vector<1x128xi32>
    %15 = arith.addi %4, %14 : vector<1x128xi32>
    %16 = arith.select %13, %15, %4 : vector<1x128xi1>, vector<1x128xi32>
    %c32_i32 = arith.constant 32 : i32
    %17 = vector.broadcast %c32_i32 : i32 to vector<1x128xi32>
    %18 = arith.cmpi slt, %0, %17 : vector<1x128xi32>
    %19 = arith.extui %18 : vector<1x128xi1> to vector<1x128xi32>
    %20 = arith.sitofp %19 : vector<1x128xi32> to vector<1x128xf32>
    %c1_i32_3 = arith.constant 1 : i32
    %21 = vector.broadcast %c1_i32_3 : i32 to vector<1x128xi32>
    %22 = arith.cmpi sge, %16, %21 : vector<1x128xi32>
    %c15_i32 = arith.constant 15 : i32
    %23 = vector.broadcast %c15_i32 : i32 to vector<1x128xi32>
    %24 = arith.cmpi slt, %16, %23 : vector<1x128xi32>
    %c0 = arith.constant 0 : index
    %c0_4 = arith.constant 0 : index
    %25 = vector.load %arg0[%c0, %c0_4] : memref<8x128xf32, #tpu.memory_space<vmem>>, vector<8x128xf32>
    %c0_5 = arith.constant 0 : index
    %c0_6 = arith.constant 0 : index
    %26 = vector.load %arg1[%c0_5, %c0_6] : memref<8x24xf32, #tpu.memory_space<vmem>>, vector<8x24xf32>
    %c1_i32_7 = arith.constant 1 : i32
    %27 = tpu.dynamic_rotate %25 by %c1_i32_7 dim 1 : vector<8x128xf32>, i32 -> vector<8x128xf32>
    %cst = arith.constant 0.000000e+00 : f32
    %28 = vector.shape_cast %22 : vector<1x128xi1> to vector<1x128xi1>
    %29 = vector.broadcast %28 : vector<1x128xi1> to vector<8x128xi1>
    %30 = vector.broadcast %cst : f32 to vector<8x128xf32>
    %31 = arith.select %29, %27, %30 : vector<8x128xi1>, vector<8x128xf32>
    %c127_i32 = arith.constant 127 : i32
    %32 = tpu.dynamic_rotate %25 by %c127_i32 dim 1 : vector<8x128xf32>, i32 -> vector<8x128xf32>
    %cst_8 = arith.constant 0.000000e+00 : f32
    %33 = vector.shape_cast %24 : vector<1x128xi1> to vector<1x128xi1>
    %34 = vector.broadcast %33 : vector<1x128xi1> to vector<8x128xi1>
    %35 = vector.broadcast %cst_8 : f32 to vector<8x128xf32>
    %36 = arith.select %34, %32, %35 : vector<8x128xi1>, vector<8x128xf32>
    %37 = tpu.concatenate %31, %25, %36 in 0 : vector<8x128xf32>, vector<8x128xf32>, vector<8x128xf32> -> vector<24x128xf32>
    %cst_9 = arith.constant dense<0.000000e+00> : vector<8x128xf32>
    %38 = tpu.matmul %26, %37, %cst_9 {dimension_numbers = #tpu.dot_dimension_numbers<[1], [0], [0], [1], [0, 0, 1, 1], [], []>} : vector<8x24xf32>, vector<24x128xf32>, vector<8x128xf32> -> vector<8x128xf32>
    %39 = vector.broadcast %20 : vector<1x128xf32> to vector<8x128xf32>
    %40 = arith.mulf %38, %39 : vector<8x128xf32>
    %cst_10 = arith.constant dense<0.000000e+00> : vector<8xf32>
    %41 = vector.multi_reduction <add>, %40, %cst_10 [1] : vector<8x128xf32> to vector<8xf32>
    %42 = vector.shape_cast %41 : vector<8xf32> to vector<8x1xf32>
    %cst_11 = arith.constant 3.125000e-02 : f32
    %43 = vector.broadcast %cst_11 : f32 to vector<8x1xf32>
    %44 = arith.mulf %42, %43 : vector<8x1xf32>
    %45 = vector.broadcast %44 : vector<8x1xf32> to vector<8x128xf32>
    %46 = arith.subf %38, %45 : vector<8x128xf32>
    %47 = vector.broadcast %20 : vector<1x128xf32> to vector<8x128xf32>
    %48 = arith.mulf %46, %47 : vector<8x128xf32>
    %49 = arith.mulf %48, %48 : vector<8x128xf32>
    %cst_12 = arith.constant dense<0.000000e+00> : vector<8xf32>
    %50 = vector.multi_reduction <add>, %49, %cst_12 [1] : vector<8x128xf32> to vector<8xf32>
    %51 = vector.shape_cast %50 : vector<8xf32> to vector<8x1xf32>
    %cst_13 = arith.constant 3.125000e-02 : f32
    %52 = vector.broadcast %cst_13 : f32 to vector<8x1xf32>
    %53 = arith.mulf %51, %52 : vector<8x1xf32>
    %c0_14 = arith.constant 0 : index
    %c0_15 = arith.constant 0 : index
    %54 = vector.load %arg2[%c0_14, %c0_15] : memref<8x1xf32, #tpu.memory_space<vmem>>, vector<8x1xf32>
    %cst_16 = arith.constant 9.99999974E-6 : f32
    %55 = vector.broadcast %cst_16 : f32 to vector<8x1xf32>
    %56 = arith.addf %53, %55 : vector<8x1xf32>
    %57 = math.rsqrt %56 : vector<8x1xf32>
    %58 = arith.mulf %54, %57 : vector<8x1xf32>
    %c0_17 = arith.constant 0 : index
    %c0_18 = arith.constant 0 : index
    %59 = vector.load %arg3[%c0_17, %c0_18] : memref<8x1xf32, #tpu.memory_space<vmem>>, vector<8x1xf32>
    %60 = arith.mulf %44, %58 : vector<8x1xf32>
    %61 = arith.subf %59, %60 : vector<8x1xf32>
    %62 = vector.broadcast %58 : vector<8x1xf32> to vector<8x128xf32>
    %63 = arith.mulf %38, %62 : vector<8x128xf32>
    %64 = vector.broadcast %61 : vector<8x1xf32> to vector<8x128xf32>
    %65 = arith.addf %63, %64 : vector<8x128xf32>
    %cst_19 = arith.constant 0.000000e+00 : f32
    %66 = vector.broadcast %cst_19 : f32 to vector<8x128xf32>
    %67 = arith.maximumf %65, %66 : vector<8x128xf32>
    %c0_20 = arith.constant 0 : index
    %c0_21 = arith.constant 0 : index
    %68 = vector.load %arg4[%c0_20, %c0_21] : memref<8x24xf32, #tpu.memory_space<vmem>>, vector<8x24xf32>
    %c1_i32_22 = arith.constant 1 : i32
    %69 = tpu.dynamic_rotate %67 by %c1_i32_22 dim 1 : vector<8x128xf32>, i32 -> vector<8x128xf32>
    %cst_23 = arith.constant 0.000000e+00 : f32
    %70 = vector.shape_cast %22 : vector<1x128xi1> to vector<1x128xi1>
    %71 = vector.broadcast %70 : vector<1x128xi1> to vector<8x128xi1>
    %72 = vector.broadcast %cst_23 : f32 to vector<8x128xf32>
    %73 = arith.select %71, %69, %72 : vector<8x128xi1>, vector<8x128xf32>
    %c127_i32_24 = arith.constant 127 : i32
    %74 = tpu.dynamic_rotate %67 by %c127_i32_24 dim 1 : vector<8x128xf32>, i32 -> vector<8x128xf32>
    %cst_25 = arith.constant 0.000000e+00 : f32
    %75 = vector.shape_cast %24 : vector<1x128xi1> to vector<1x128xi1>
    %76 = vector.broadcast %75 : vector<1x128xi1> to vector<8x128xi1>
    %77 = vector.broadcast %cst_25 : f32 to vector<8x128xf32>
    %78 = arith.select %76, %74, %77 : vector<8x128xi1>, vector<8x128xf32>
    %79 = tpu.concatenate %73, %67, %78 in 0 : vector<8x128xf32>, vector<8x128xf32>, vector<8x128xf32> -> vector<24x128xf32>
    %cst_26 = arith.constant dense<0.000000e+00> : vector<8x128xf32>
    %80 = tpu.matmul %68, %79, %cst_26 {dimension_numbers = #tpu.dot_dimension_numbers<[1], [0], [0], [1], [0, 0, 1, 1], [], []>} : vector<8x24xf32>, vector<24x128xf32>, vector<8x128xf32> -> vector<8x128xf32>
    %81 = vector.broadcast %20 : vector<1x128xf32> to vector<8x128xf32>
    %82 = arith.mulf %80, %81 : vector<8x128xf32>
    %cst_27 = arith.constant dense<0.000000e+00> : vector<8xf32>
    %83 = vector.multi_reduction <add>, %82, %cst_27 [1] : vector<8x128xf32> to vector<8xf32>
    %84 = vector.shape_cast %83 : vector<8xf32> to vector<8x1xf32>
    %cst_28 = arith.constant 3.125000e-02 : f32
    %85 = vector.broadcast %cst_28 : f32 to vector<8x1xf32>
    %86 = arith.mulf %84, %85 : vector<8x1xf32>
    %87 = vector.broadcast %86 : vector<8x1xf32> to vector<8x128xf32>
    %88 = arith.subf %80, %87 : vector<8x128xf32>
    %89 = vector.broadcast %20 : vector<1x128xf32> to vector<8x128xf32>
    %90 = arith.mulf %88, %89 : vector<8x128xf32>
    %91 = arith.mulf %90, %90 : vector<8x128xf32>
    %cst_29 = arith.constant dense<0.000000e+00> : vector<8xf32>
    %92 = vector.multi_reduction <add>, %91, %cst_29 [1] : vector<8x128xf32> to vector<8xf32>
    %93 = vector.shape_cast %92 : vector<8xf32> to vector<8x1xf32>
    %cst_30 = arith.constant 3.125000e-02 : f32
    %94 = vector.broadcast %cst_30 : f32 to vector<8x1xf32>
    %95 = arith.mulf %93, %94 : vector<8x1xf32>
    %c0_31 = arith.constant 0 : index
    %c0_32 = arith.constant 0 : index
    %96 = vector.load %arg5[%c0_31, %c0_32] : memref<8x1xf32, #tpu.memory_space<vmem>>, vector<8x1xf32>
    %cst_33 = arith.constant 9.99999974E-6 : f32
    %97 = vector.broadcast %cst_33 : f32 to vector<8x1xf32>
    %98 = arith.addf %95, %97 : vector<8x1xf32>
    %99 = math.rsqrt %98 : vector<8x1xf32>
    %100 = arith.mulf %96, %99 : vector<8x1xf32>
    %c0_34 = arith.constant 0 : index
    %c0_35 = arith.constant 0 : index
    %101 = vector.load %arg6[%c0_34, %c0_35] : memref<8x1xf32, #tpu.memory_space<vmem>>, vector<8x1xf32>
    %102 = arith.mulf %86, %100 : vector<8x1xf32>
    %103 = arith.subf %101, %102 : vector<8x1xf32>
    %104 = vector.broadcast %100 : vector<8x1xf32> to vector<8x128xf32>
    %105 = arith.mulf %80, %104 : vector<8x128xf32>
    %106 = vector.broadcast %103 : vector<8x1xf32> to vector<8x128xf32>
    %107 = arith.addf %105, %106 : vector<8x128xf32>
    %c0_36 = arith.constant 0 : index
    %c0_37 = arith.constant 0 : index
    %108 = vector.load %arg7[%c0_36, %c0_37] : memref<8x8xf32, #tpu.memory_space<vmem>>, vector<8x8xf32>
    %cst_38 = arith.constant dense<0.000000e+00> : vector<8x128xf32>
    %109 = tpu.matmul %108, %25, %cst_38 {dimension_numbers = #tpu.dot_dimension_numbers<[1], [0], [0], [1], [0, 0, 1, 1], [], []>} : vector<8x8xf32>, vector<8x128xf32>, vector<8x128xf32> -> vector<8x128xf32>
    %110 = vector.broadcast %20 : vector<1x128xf32> to vector<8x128xf32>
    %111 = arith.mulf %109, %110 : vector<8x128xf32>
    %cst_39 = arith.constant dense<0.000000e+00> : vector<8xf32>
    %112 = vector.multi_reduction <add>, %111, %cst_39 [1] : vector<8x128xf32> to vector<8xf32>
    %113 = vector.shape_cast %112 : vector<8xf32> to vector<8x1xf32>
    %cst_40 = arith.constant 3.125000e-02 : f32
    %114 = vector.broadcast %cst_40 : f32 to vector<8x1xf32>
    %115 = arith.mulf %113, %114 : vector<8x1xf32>
    %116 = vector.broadcast %115 : vector<8x1xf32> to vector<8x128xf32>
    %117 = arith.subf %109, %116 : vector<8x128xf32>
    %118 = vector.broadcast %20 : vector<1x128xf32> to vector<8x128xf32>
    %119 = arith.mulf %117, %118 : vector<8x128xf32>
    %120 = arith.mulf %119, %119 : vector<8x128xf32>
    %cst_41 = arith.constant dense<0.000000e+00> : vector<8xf32>
    %121 = vector.multi_reduction <add>, %120, %cst_41 [1] : vector<8x128xf32> to vector<8xf32>
    %122 = vector.shape_cast %121 : vector<8xf32> to vector<8x1xf32>
    %cst_42 = arith.constant 3.125000e-02 : f32
    %123 = vector.broadcast %cst_42 : f32 to vector<8x1xf32>
    %124 = arith.mulf %122, %123 : vector<8x1xf32>
    %c0_43 = arith.constant 0 : index
    %c0_44 = arith.constant 0 : index
    %125 = vector.load %arg8[%c0_43, %c0_44] : memref<8x1xf32, #tpu.memory_space<vmem>>, vector<8x1xf32>
    %cst_45 = arith.constant 9.99999974E-6 : f32
    %126 = vector.broadcast %cst_45 : f32 to vector<8x1xf32>
    %127 = arith.addf %124, %126 : vector<8x1xf32>
    %128 = math.rsqrt %127 : vector<8x1xf32>
    %129 = arith.mulf %125, %128 : vector<8x1xf32>
    %c0_46 = arith.constant 0 : index
    %c0_47 = arith.constant 0 : index
    %130 = vector.load %arg9[%c0_46, %c0_47] : memref<8x1xf32, #tpu.memory_space<vmem>>, vector<8x1xf32>
    %131 = arith.mulf %115, %129 : vector<8x1xf32>
    %132 = arith.subf %130, %131 : vector<8x1xf32>
    %133 = vector.broadcast %129 : vector<8x1xf32> to vector<8x128xf32>
    %134 = arith.mulf %109, %133 : vector<8x128xf32>
    %135 = vector.broadcast %132 : vector<8x1xf32> to vector<8x128xf32>
    %136 = arith.addf %134, %135 : vector<8x128xf32>
    %137 = arith.addf %107, %136 : vector<8x128xf32>
    %cst_48 = arith.constant 0.000000e+00 : f32
    %138 = vector.broadcast %cst_48 : f32 to vector<8x128xf32>
    %139 = arith.maximumf %137, %138 : vector<8x128xf32>
    %c0_49 = arith.constant 0 : index
    %c0_50 = arith.constant 0 : index
    %140 = vector.load %arg10[%c0_49, %c0_50] : memref<8x128xf32, #tpu.memory_space<vmem>>, vector<8x128xf32>
    tpu.vector_store %arg10[%c0_49, %c0_50], %139 {strides = array<i32>} : memref<8x128xf32, #tpu.memory_space<vmem>>, vector<8x128xf32>,
    return
  }
}

</mosaic_0001>

<bundles_post_ra>
// kernel: tpu_custom_call.1
= control target key start
LH: loop header
LB: loop body
LE: loop exit
PB: predicated region body
PF: predicated region fallthrough
CT: control target
= control target key end

     0   :  { %s490_s15 = smov 1   ;;  %v491_v1 = vmov 0.0|0.0   ;;  %s627_s0 = inlined_call_operand.vmem [shape: f32[8,128], index: 0, kind: input, shape index: {}]   ;;  %s628_s1 = inlined_call_operand.vmem [shape: f32[8,24], index: 1, kind: input, shape index: {}]   ;;  %s629_s2 = inlined_call_operand.vmem [shape: f32[8,1], index: 2, kind: input, shape index: {}]   ;;  %s630_s3 = inlined_call_operand.vmem [shape: f32[8,1], index: 3, kind: input, shape index: {}]   ;;  %s631_s4 = inlined_call_operand.vmem [shape: f32[8,24], index: 4, kind: input, shape index: {}]   ;;  %s632_s5 = inlined_call_operand.vmem [shape: f32[8,1], index: 5, kind: input, shape index: {}]   ;;  %s633_s6 = inlined_call_operand.vmem [shape: f32[8,1], index: 6, kind: input, shape index: {}]   ;;  %s634_s7 = inlined_call_operand.vmem [shape: f32[8,8], index: 7, kind: input, shape index: {}]   ;;  %s635_s8 = inlined_call_operand.vmem [shape: f32[8,1], index: 8, kind: input, shape index: {}]   ;;  %s636_s9 = inlined_call_operand.vmem [shape: f32[8,1], index: 9, kind: input, shape index: {}]   ;;  %s637_s10 = inlined_call_operand.hbm [shape: f32[8,128], index: 10, kind: output, shape index: {}]  }
   0x1   :  { %v55_v0 = vld [vmem:[%s627_s0] sm:$0xff]  ;;  %442 = vmatprep.subr.bf16.mxu0 %v491_v1 }
   0x2   :  { %57 = vrot.lane.b32.xlu0 %v55_v0, %s490_s15 }
   0x3   :  { %15 = vsyncpa [#allocation3], 0  ;;  %vm492_vm0 = vmmov 0   ;;  %v493_v2 = vmov 0.0   ;;  %446 = vmatprep.subr.bf16.mxu1 %v491_v1  ;;  %s494_s16 = smov 127   ;;  %v36_v3 = vlaneseq  ;;  %vm495_vm2 = vmmov 1  }
   0x4   :  { %425 = vmatprep.mubr.msk.f32.mxu0 %vm492_vm0, %v493_v2  ;;  %434 = vmatprep.mubr.msk.f32.mxu1 %vm492_vm0, %v493_v2  ;;  %v56_v11 = vld [vmem:[%s628_s1] sm:$0xff]  ;;  %vm67_vm5 = vcmask 195584   ;;  %v496_v21 = vmov 0   ;;  %vm281_vm7 = vcmask 64512  }
   0x5   :  { %v37_v4 = vand.u32 127, %v36_v3  ;;  %458 = vset.pattern.permute.xlu0 %v496_v21  ;;  %459 = vset.pattern.permute.xlu1 %v496_v21  ;;  %v280_v22 = vld [vmem:[%s634_s7] sm:$0xff] }
   0x6   :  { %62 = vrot.lane.b32.xlu0 %v55_v0, %s494_s16  ;;  %v151_v26 = vld [vmem:[%s629_s2] sm:$0xff] }
   0x7   :  { %v42_v5 = vand.u32 15, %v37_v4  ;;  %vm50_vm6 = vcmp.lt.s32.totalorder %v37_v4, 32  ;;  %v155_v29 = vld [vmem:[%s630_s3] sm:$0xff] }
   0x8   :  { %v401_v12 = vsel %vm50_vm6, 1.0, %v493_v2  ;;  %v171_v42 = vld [vmem:[%s631_s4] sm:$0xff] }
   0x9   :  { %vm53_vm1 = vcmp.ge.s32.totalorder %v42_v5, 1  ;;  %vm569_vm4 = vcmp.lt.s32.totalorder %v42_v5, 15  ;;  %v261_v63 = vld [vmem:[%s632_s5] sm:$0xff]  ;;  %s497_s5 = smov [#allocation2]  }
   0xa   :  { %vm562_vm3 = vmpackc.low %vm495_vm2, %vm53_vm1  ;;  %v365_v3 = vld [vmem:[%s635_s8] sm:$0xff] }
  0x74   :  { %v58_v6 = vpop.permute.xlu0 %57 }
  0x75   :  { %v443_v8 = vpack.c.bf16 %v55_v0, %v58_v6 }
  0x77   :  { %445 = vmatpush3.bf16.msk.msra.mxu0 %vm562_vm3, %v443_v8  ;;  %v369_v8 = vld [vmem:[%s636_s9] sm:$0xff] }
  0x78   :  { %v63_v9 = vpop.permute.xlu0 %62  ;;  %423 = vmatprep.subr.mxu0 %v493_v2 }
  0x7b   :  { %424 = vmatpush3.msk.msra.mxu0 %vm569_vm4, %v63_v9 }
  0x7c   :  { %426 = vmatmul.mubr.msk.f32.vlgmr.msra.gmra.mrb[0].mxu0 %vm67_vm5, %v56_v11  ;;  %437 = vmatprep.subr.mxu0 %v493_v2 }
  0x7d   :  { %438 = vmatpush3.msra.mxu0 %v55_v0  ;;  %439 = vmatprep.mubr.msk.f32.mxu0 %vm492_vm0, %v493_v2 }
  0x80   :  { %440 = vmatmul.mubr.msk.f32.vlgmr.msra.gmra.mrb[2].mxu0 %vm281_vm7, %v280_v22 }
 0x14f   :  { %v137_v13 = vpop.f32.mrb[0].mxu0 }
 0x150   :  { %v427_v14 = vpop.f32.mrb[1].mxu0  ;;  %v141_v15 = vmul.f32 %v401_v12, %v137_v13 }
 0x152   :  { %142 = vadd.xlane.f32.xlu1 %v141_v15 }
 0x153   :  { %v351_v34 = vpop.f32.mrb[2].mxu0 }
 0x154   :  { %v355_v36 = vmul.f32 %v401_v12, %v351_v34  ;;  %v441_v37 = vpop.f32.mrb[3].mxu0 }
 0x1df   :  { %v143_v16 = vpop.xlane.xlu1 %142 }
 0x1e0   :  { %v144_v17 = vmul.f32 0.03125, %v143_v16 }
 0x1e2   :  { %v145_v18 = vsub.f32 %v137_v13, %v144_v17 }
 0x1e4   :  { %v146_v19 = vmul.f32 %v401_v12, %v145_v18 }
 0x1e6   :  { %v147_v20 = vmul.f32 %v146_v19, %v146_v19 }
 0x1e8   :  { %148 = vadd.xlane.f32.xlu1 %v147_v20 }
 0x275   :  { %v149_v23 = vpop.xlane.xlu1 %148 }
 0x276   :  { %v150_v24 = vmul.f32 0.03125, %v149_v23 }
 0x278   :  { %v152_v25 = vadd.f32 1e-05, %v150_v24 }
 0x27a   :  { %460 = vrsqrt.f32 %v152_v25 }
 0x284   :  { %v461_v27 = vpop.eup %460 }
 0x285   :  { %v154_v28 = vmul.f32 %v461_v27, %v151_v26 }
 0x287   :  { %160 = vperm.xlu0 %458, %v154_v28   ;;  %v156_v30 = vmul.f32 %v154_v28, %v144_v17 }
 0x289   :  { %v157_v31 = vsub.f32 %v155_v29, %v156_v30 }
 0x28b   :  { %166 = vperm.xlu1 %459, %v157_v31  }
 0x2af   :  { %356 = vadd.xlane.f32.xlu1 %v355_v36 }
 0x306   :  { %v161_v32 = vpop.permute.xlu0 %160 }
 0x307   :  { %v163_v33 = vmul.f32 %v161_v32, %v137_v13 }
 0x30a   :  { %v167_v35 = vpop.permute.xlu1 %166 }
 0x30b   :  { %v169_v38 = vadd.f32 %v167_v35, %v163_v33 }
 0x30d   :  { %v170_v39 = vmax.f32 %v169_v38, 0.0 }
 0x30f   :  { %172 = vrot.lane.b32.xlu0 %v170_v39, %s490_s15 }
 0x313   :  { %175 = vrot.lane.b32.xlu0 %v170_v39, %s494_s16 }
 0x33c   :  { %v357_v47 = vpop.xlane.xlu1 %356 }
 0x33d   :  { %v358_v48 = vmul.f32 0.03125, %v357_v47 }
 0x33f   :  { %v359_v51 = vsub.f32 %v351_v34, %v358_v48 }
 0x341   :  { %v360_v55 = vmul.f32 %v401_v12, %v359_v51 }
 0x343   :  { %v361_v56 = vmul.f32 %v360_v55, %v360_v55 }
 0x381   :  { %v173_v40 = vpop.permute.xlu0 %172 }
 0x382   :  { %v447_v41 = vpack.c.bf16 %v170_v39, %v173_v40 }
 0x384   :  { %449 = vmatpush3.bf16.msk.msra.mxu1 %vm562_vm3, %v447_v41 }
 0x385   :  { %432 = vmatprep.subr.mxu1 %v493_v2  ;;  %v176_v43 = vpop.permute.xlu0 %175  ;;  %v265_v2 = vld [vmem:[%s633_s6] sm:$0xff]  ;;  %s393_s6 = sshll.u32 %s497_s5, 4  ;;  %s394_s6 = int_to_ptr.vmem [resolvable:$true] %s393_s6 }
 0x386   :  { %s466_s8 = scalar_lea.vmem %s394_s6, 128  ;;  %p471_p1 = scmp.lt.s32.totalorder %s394_s6, %s394_s6 }
 0x387   :  { %p467_p0 = scmp.ne.s32.totalorder %s394_s6, %s466_s8  ;;  %p472_p2 = scmp.lt.s32.totalorder %s466_s8, %s466_s8 }
 0x388   :  { %433 = vmatpush3.msk.msra.mxu1 %vm569_vm4, %v176_v43 }
 0x389   :  { %435 = vmatmul.mubr.msk.f32.vlgmr.msra.gmra.mrb[0].mxu1 %vm67_vm5, %v171_v42  ;;  %p473_p3 = por %p472_p2, %p471_p1 }
 0x38b   :  { %p474_p4 = pnand %p473_p3, %p467_p0 }
 0x45c   :  { %v247_v44 = vpop.f32.mrb[0].mxu1 }
 0x45d   :  { %v436_v45 = vpop.f32.mrb[1].mxu1  ;;  %v251_v46 = vmul.f32 %v401_v12, %v247_v44 }
 0x45f   :  { %252 = vadd.xlane.f32.xlu0 %v251_v46 }
 0x4ec   :  { %v253_v49 = vpop.xlane.xlu0 %252 }
 0x4ed   :  { %v254_v50 = vmul.f32 0.03125, %v253_v49 }
 0x4ef   :  { %v255_v52 = vsub.f32 %v247_v44, %v254_v50 }
 0x4f1   :  { %v256_v53 = vmul.f32 %v401_v12, %v255_v52 }
 0x4f3   :  { %v257_v54 = vmul.f32 %v256_v53, %v256_v53 }
 0x4f5   :  { %258 = vadd.xlane.f32.xlu0 %v257_v54 }
 0x4f9   :  { %362 = vadd.xlane.f32.xlu0 %v361_v56 }
 0x582   :  { %v259_v57 = vpop.xlane.xlu0 %258 }
 0x583   :  { %v260_v58 = vmul.f32 0.03125, %v259_v57 }
 0x585   :  { %v262_v59 = vadd.f32 1e-05, %v260_v58 }
 0x586   :  { %v363_v60 = vpop.xlane.xlu0 %362 }
 0x587   :  { %462 = vrsqrt.f32 %v262_v59  ;;  %v364_v61 = vmul.f32 0.03125, %v363_v60 }
 0x589   :  { %v366_v62 = vadd.f32 1e-05, %v364_v61 }
 0x58b   :  { %464 = vrsqrt.f32 %v366_v62 }
 0x591   :  { %v463_v0 = vpop.eup %462 }
 0x592   :  { %v264_v1 = vmul.f32 %v463_v0, %v261_v63 }
 0x594   :  { %270 = vperm.xlu1 %459, %v264_v1   ;;  %v266_v4 = vmul.f32 %v264_v1, %v254_v50 }
 0x595   :  { %v465_v5 = vpop.eup %464 }
 0x596   :  { %v267_v6 = vsub.f32 %v265_v2, %v266_v4  ;;  %v368_v7 = vmul.f32 %v465_v5, %v365_v3 }
 0x598   :  { %276 = vperm.xlu1 %459, %v267_v6   ;;  %374 = vperm.xlu0 %458, %v368_v7   ;;  %v370_v9 = vmul.f32 %v368_v7, %v358_v48 }
 0x59a   :  { %v371_v10 = vsub.f32 %v369_v8, %v370_v9 }
 0x59c   :  { %380 = vperm.xlu1 %459, %v371_v10  }
 0x613   :  { %v271_v11 = vpop.permute.xlu1 %270 }
 0x614   :  { %v273_v14 = vmul.f32 %v271_v11, %v247_v44 }
 0x617   :  { %v375_v12 = vpop.permute.xlu0 %374  ;;  %v277_v13 = vpop.permute.xlu1 %276 }
 0x618   :  { %v377_v15 = vmul.f32 %v375_v12, %v351_v34  ;;  %v279_v17 = vadd.f32 %v277_v13, %v273_v14 }
 0x61b   :  { %v381_v16 = vpop.permute.xlu1 %380 }
 0x61c   :  { %v383_v18 = vadd.f32 %v381_v16, %v377_v15 }
 0x61e   :  { %v384_v19 = vadd.f32 %v383_v18, %v279_v17 }
 0x620   :  { %v385_v20 = vmax.f32 %v384_v19, 0.0 }
 0x622   :  { %386 = vst [vmem:[#allocation2] sm:$0xff] %v385_v20 }
 0x623   :  { %477 = shalt.err (!%p474_p4)
}
 0x624   :  { %s478_s30 = scalar_lea.hbm %s637_s10, 128 }
 0x625   :  { %p479_p5 = scmp.ne.s32.totalorder %s637_s10, %s478_s30  ;;  %p482_p6 = scmp.lt.u32.totalorder %s478_s30, %s637_s10 }
 0x627   :  { %p484_p7 = pnand %p482_p6, %p479_p5 }
 0x629   :  { %487 = shalt.err (!%p484_p7)
}
 0x62a   :  { %396 = dma.vmem_to_hbm [thread:$0]  %s394_s6, 128, %s637_s10, [#allocation3]  }
 0x62b   :  { %488 = dma.done.wait [#allocation3], 128  }
 0x62c   :  { %489 = vsyncadd [#allocation3], 4294967168 }
 0x62d   :  { %400 = vsyncpa [#allocation3], 1 }

</bundles_post_ra>
